<compile_context>
chip_gen: v7x
topology: tpu7x:2x2x1
jax: 0.10.0
libtpu: 0.0.40
codegen_flags: <defaults>
</compile_context>

<pallas_src>
import math

import jax
import jax.numpy as jnp
from jax.experimental import pallas as pl
from jax.experimental.pallas import tpu as pltpu


def _round_up(a, b):
    return ((a + b - 1) // b) * b


def _pad_feat(f):
    # lane-dense feature dims; dims >128 rounded for the 256-wide v6e/v7x MXU
    return 128 if f <= 128 else _round_up(f, 256)


def _vmem_budget_bytes():
    cap = 64 << 20                       # conservative fallback (v7x physical)
    try:
        cap = int(pltpu.get_tpu_info().vmem_capacity_bytes)
    except Exception:
        pass
    return (cap * 3) // 4                # leave ~25% headroom


# --------------------- stage 1: per-relation node transform -----------------
def _transform_kernel(occ_ref, x_ref, w1_ref, w2_ref, b1_ref, h2_ref):
    r = pl.program_id(0)
    i = pl.program_id(1)
    n_tiles = pl.num_programs(1)
    live = occ_ref[r * n_tiles + i] > 0

    @pl.when(live)
    def _():
        # h1 = relu(X @ W1[r] + b1)  (f32 accumulate, f32 bias + ReLU on VPU)
        h1 = jnp.dot(x_ref[...], w1_ref[0], preferred_element_type=jnp.float32)
        h1 = jnp.maximum(h1 + b1_ref[...], 0.0)
        # h2 = h1 @ W2[r]
        h2 = jnp.dot(h1.astype(w2_ref.dtype), w2_ref[0],
                     preferred_element_type=jnp.float32)
        h2_ref[0] = h2.astype(h2_ref.dtype)

    @pl.when(jnp.logical_not(live))
    def _():
        # No edge of relation r leaves this src tile: these H2 rows only ever
        # multiply zero A columns, so skip both MXU passes and write zeros.
        h2_ref[0] = jnp.zeros(h2_ref.shape[1:], h2_ref.dtype)


# --------------------- stage 2: scatter-sum over relations ------------------
def _aggregate_kernel(cnt_ref, rid_ref, a_ref, h2_ref, b2_ref, out_ref):
    i = pl.program_id(0)          # dst tile                  ("parallel")
    r = pl.program_id(1)          # compacted relation slot   ("arbitrary")
    j = pl.program_id(2)          # src / contraction tile    ("arbitrary")

    @pl.when((r == 0) & (j == 0))
    def _():
        out_ref[...] = jnp.zeros_like(out_ref)

    # Slots beyond the number of relations present in this dst tile are
    # no-ops; their A / H2 DMAs were already elided by the index_maps
    # (repeated block indices).
    @pl.when(r < cnt_ref[i])
    def _():
        out_ref[...] += jnp.dot(a_ref[0], h2_ref[0],
                                preferred_element_type=jnp.float32)

    @pl.when((r == pl.num_programs(1) - 1) & (j == pl.num_programs(2) - 1))
    def _():
        out_ref[...] = jnp.maximum(out_ref[...] + b2_ref[...], 0.0)


def rgcn_forward(x, w1, w2, b1, b2, src, dst, rel, norm, *,
                 compute_dtype=jnp.bfloat16, adj_dtype=None, max_tile=2048):
    """One RGCNLayer forward (bias=True, activation=ReLU).

    x: (N, in_feat); w1: (R, in, in); w2: (R, in, out); b1: (1, in);
    b2: (1, out); src/dst/rel: (E,) int; norm: (E,) f32.
    Returns (N, out_feat) in x.dtype."""
    n, in_feat = x.shape
    num_rels = w1.shape[0]
    out_feat = w2.shape[2]
    cdt = compute_dtype
    adt = cdt if adj_dtype is None else adj_dtype

    in_p = _pad_feat(in_feat)
    out_p = _pad_feat(out_feat)
    bpe_a = jnp.dtype(adt).itemsize
    bpe_c = jnp.dtype(cdt).itemsize

    # --- generation-aware tile size (VMEM bounded independent of N) ---------
    def s1_need(t):   # X + W1 + W2 + H2-out double buffers, b1
        return (2 * t * in_p * bpe_c + 2 * in_p * in_p * bpe_c
                + 2 * in_p * out_p * bpe_c + 2 * t * out_p * bpe_c
                + 4 * in_p * 4 + (2 << 20))

    def s2_need(t):   # A + H2 double buffers + resident f32 out tile + b2
        return (2 * t * t * bpe_a + 2 * t * out_p * bpe_c
                + t * out_p * 4 + 4 * out_p * 4 + (2 << 20))

    budget = _vmem_budget_bytes()
    tile = 128
    for t in (2048, 1024, 512, 256, 128):
        if t <= max_tile and max(s1_need(t), s2_need(t)) <= budget:
            tile = t
            break

    n_pad = _round_up(n, 128)            # lane-dense src dim / MXU K dim
    if n_pad <= tile:
        tile = n_pad                     # single tile (still a 128-multiple)
    else:
        n_pad = _round_up(n, tile)
    n_tiles = n_pad // tile

    # --- zero-padded dense operands (exact: padded rows/cols contribute 0) --
    x_p = jnp.zeros((n_pad, in_p), cdt).at[:n, :in_feat].set(x.astype(cdt))
    w1_p = jnp.zeros((num_rels, in_p, in_p), cdt
                     ).at[:, :in_feat, :in_feat].set(w1.astype(cdt))
    w2_p = jnp.zeros((num_rels, in_p, out_p), cdt
                     ).at[:, :in_feat, :out_feat].set(w2.astype(cdt))
    b1_p = jnp.zeros((1, in_p), jnp.float32).at[:, :in_feat].set(
        b1.astype(jnp.float32))
    b2_p = jnp.zeros((1, out_p), jnp.float32).at[:, :out_feat].set(
        b2.astype(jnp.float32))

    # A[r, dst, src] = summed edge norms.  Duplicate-edge norms accumulate in
    # f32 and are cast once, so a bf16 A still carries accurate sums.
    adj_p = jnp.zeros((num_rels, n_pad, n_pad), jnp.float32
                      ).at[rel, dst, src].add(norm.astype(jnp.float32))
    if adt != jnp.float32:
        adj_p = adj_p.astype(adt)

    # --- O(E) occupancy tables (flat 1-D int32: no 2-D SMEM lane padding) ---
    ones = jnp.ones(rel.shape, jnp.int32)
    occ_dr = (jnp.zeros((n_tiles, num_rels), jnp.int32)
              .at[dst // tile, rel].add(ones) > 0).astype(jnp.int32)
    cnt = occ_dr.sum(axis=1).astype(jnp.int32)                  # (n_tiles,)
    # compacted per-dst-tile relation ids: present relations first (ascending)
    rid = jnp.argsort(-occ_dr, axis=1).astype(jnp.int32).reshape(-1)
    occ_rs = (jnp.zeros((num_rels, n_tiles), jnp.int32)
              .at[rel, src // tile].add(ones) > 0
              ).astype(jnp.int32).reshape(-1)

    def _params(sem, need):
        kw = {}
        if need > (14 << 20):            # above the smallest default limit
            kw["vmem_limit_bytes"] = int(min(budget, need + (4 << 20)))
        return pltpu.CompilerParams(dimension_semantics=sem, **kw)

    # ---- stage 1: H2[r] = relu(X @ W1[r] + b1) @ W2[r] ----------------------
    h2 = pl.pallas_call(
        _transform_kernel,
        out_shape=jax.ShapeDtypeStruct((num_rels, n_pad, out_p), cdt),
        grid_spec=pltpu.PrefetchScalarGridSpec(
            num_scalar_prefetch=1,                        # occ_rs -> SMEM
            grid=(num_rels, n_tiles),
            in_specs=[
                pl.BlockSpec((tile, in_p), lambda r, i, occ: (i, 0)),         # X
                pl.BlockSpec((1, in_p, in_p), lambda r, i, occ: (r, 0, 0)),   # W1[r]
                pl.BlockSpec((1, in_p, out_p), lambda r, i, occ: (r, 0, 0)),  # W2[r]
                pl.BlockSpec((1, in_p), lambda r, i, occ: (0, 0)),            # b1
            ],
            out_specs=pl.BlockSpec((1, tile, out_p),
                                   lambda r, i, occ: (r, i, 0)),
        ),
        compiler_params=_params(("arbitrary", "parallel"), s1_need(tile)),
    )(occ_rs, x_p, w1_p, w2_p, b1_p)

    # Index maps for stage 2: for compacted slots past cnt[i] (relation not
    # present in this dst tile) return the PREVIOUS grid step's block index so
    # Pallas skips the DMA entirely (A is the bandwidth bottleneck).
    def a_map(i, r, j, cnt_ref, rid_ref):
        k = jnp.minimum(r, jnp.maximum(cnt_ref[i] - 1, 0))
        jj = jnp.where(r < cnt_ref[i], j, n_tiles - 1)
        return (rid_ref[i * num_rels + k], i, jj)

    def h2_map(i, r, j, cnt_ref, rid_ref):
        k = jnp.minimum(r, jnp.maximum(cnt_ref[i] - 1, 0))
        jj = jnp.where(r < cnt_ref[i], j, n_tiles - 1)
        return (rid_ref[i * num_rels + k], jj, 0)

    # ---- stage 2: out = relu(sum_r A[r] @ H2[r] + b2) ------------------------
    out = pl.pallas_call(
        _aggregate_kernel,
        out_shape=jax.ShapeDtypeStruct((n_pad, out_p), jnp.float32),
        grid_spec=pltpu.PrefetchScalarGridSpec(
            num_scalar_prefetch=2,                        # cnt, rid -> SMEM
            grid=(n_tiles, num_rels, n_tiles),
            in_specs=[
                pl.BlockSpec((1, tile, tile), a_map),                      # A tile
                pl.BlockSpec((1, tile, out_p), h2_map),                    # H2 tile
                pl.BlockSpec((1, out_p), lambda i, r, j, c, g: (0, 0)),    # b2
            ],
            out_specs=pl.BlockSpec((tile, out_p),
                                   lambda i, r, j, c, g: (i, 0)),
        ),
        compiler_params=_params(("parallel", "arbitrary", "arbitrary"),
                                s2_need(tile)),
    )(cnt, rid, adj_p, h2, b2_p)

    return out[:n, :out_feat].astype(x.dtype)


# ------------------------------- reference -----------------------------------
def xavier_uniform(key, shape, gain):
    fan_in = shape[-2] if len(shape) >= 2 else shape[-1]
    fan_out = shape[-1]
    bound = gain * math.sqrt(6.0 / (fan_in + fan_out))
    return jax.random.uniform(key, shape, jnp.float32, -bound, bound)


def reference_forward(src, dst, rel, norm, x, w1, w2, b1, b2):
    # Pure-JAX edge-wise reference matching the PyTorch message/apply funcs.
    msg = jnp.einsum('ei,eij->ej', x[src], w1[rel]) + b1[0]
    msg = jnp.maximum(msg, 0.0)
    msg = jnp.einsum('ei,eio->eo', msg, w2[rel])
    msg = msg * norm[:, None]
    h = jnp.zeros((x.shape[0], w2.shape[2]), jnp.float32).at[dst].add(msg)
    h = h + b2[0]
    return jnp.maximum(h, 0.0)


if __name__ == "__main__":
    key = jax.random.PRNGKey(0)
    gain = math.sqrt(2.0)  # calculate_gain('relu')

    # ---- test 1: small graph, exact f32 path + bf16 production path ---------
    k_w1, k_w2, k_b1, k_b2, k_x, k_src, k_dst, k_rel, k_norm, k2 = \
        jax.random.split(key, 10)

    N, IN_FEAT, OUT_FEAT, NUM_RELS, E = 16, 8, 16, 3, 48
    w1 = xavier_uniform(k_w1, (NUM_RELS, IN_FEAT, IN_FEAT), gain)
    w2 = xavier_uniform(k_w2, (NUM_RELS, IN_FEAT, OUT_FEAT), gain)
    b1 = xavier_uniform(k_b1, (1, IN_FEAT), gain)   # torch (in_feat,1) squeezed
    b2 = xavier_uniform(k_b2, (1, OUT_FEAT), gain)  # torch (out_feat,1) squeezed
    x = jax.random.normal(k_x, (N, IN_FEAT), jnp.float32)
    src = jax.random.randint(k_src, (E,), 0, N)
    dst = jax.random.randint(k_dst, (E,), 0, N)
    rel = jax.random.randint(k_rel, (E,), 0, NUM_RELS)
    norm = jax.random.uniform(k_norm, (E,), jnp.float32, 0.1, 1.0)

    ref = reference_forward(src, dst, rel, norm, x, w1, w2, b1, b2)

    out_f32 = jax.block_until_ready(
        rgcn_forward(x, w1, w2, b1, b2, src, dst, rel, norm,
                     compute_dtype=jnp.float32))
    assert out_f32.shape == (N, OUT_FEAT)
    assert jnp.allclose(out_f32, ref, atol=1e-4, rtol=1e-4), "f32 mismatch"

    out_bf16 = jax.block_until_ready(
        rgcn_forward(x, w1, w2, b1, b2, src, dst, rel, norm,
                     compute_dtype=jnp.bfloat16))
    assert out_bf16.shape == (N, OUT_FEAT)
    assert jnp.allclose(out_bf16, ref, atol=0.15, rtol=0.05), "bf16 mismatch"

    # ---- test 2: multi-tile graph with empty (dst_tile, rel) combos ---------
    # (exercises the DMA-eliding compacted-relation path and stage-1 skips)
    k_w1, k_w2, k_b1, k_b2, k_x, k_src, k_dst, k_rel, k_norm = \
        jax.random.split(k2, 9)
    N2, IN2, OUT2, R2, E2 = 300, 8, 16, 4, 64
    w1b = xavier_uniform(k_w1, (R2, IN2, IN2), gain)
    w2b = xavier_uniform(k_w2, (R2, IN2, OUT2), gain)
    b1b = xavier_uniform(k_b1, (1, IN2), gain)
    b2b = xavier_uniform(k_b2, (1, OUT2), gain)
    xb = jax.random.normal(k_x, (N2, IN2), jnp.float32)
    srcb = jax.random.randint(k_src, (E2,), 0, N2)
    dstb = jax.random.randint(k_dst, (E2,), 0, N2)
    relb = jax.random.randint(k_rel, (E2,), 0, R2)
    normb = jax.random.uniform(k_norm, (E2,), jnp.float32, 0.1, 1.0)
    # force empty tiles: last relation only targets dst < 100; relation 0 only
    # leaves src < 100 (so some dst-tile/rel and rel/src-tile blocks are empty)
    dstb = jnp.where(relb == R2 - 1, dstb % 100, dstb)
    srcb = jnp.where(relb == 0, srcb % 100, srcb)

    refb = reference_forward(srcb, dstb, relb, normb, xb, w1b, w2b, b1b, b2b)
    outb = jax.block_until_ready(
        rgcn_forward(xb, w1b, w2b, b1b, b2b, srcb, dstb, relb, normb,
                     compute_dtype=jnp.float32, max_tile=128))
    assert outb.shape == (N2, OUT2)
    assert jnp.allclose(outb, refb, atol=1e-4, rtol=1e-4), "multi-tile mismatch"

    print("KERNEL_OK")
</pallas_src>

<mosaic_0001>
module attributes {stable_mosaic.version = 11 : i64} {
  func.func @_transform_kernel(%arg0: i32, %arg1: i32, %arg2: memref<3xi32, #tpu.memory_space<smem>>, %arg3: memref<128x128xf32, #tpu.memory_space<vmem>>, %arg4: memref<1x128x128xf32, #tpu.memory_space<vmem>>, %arg5: memref<1x128x128xf32, #tpu.memory_space<vmem>>, %arg6: memref<1x128xf32, #tpu.memory_space<vmem>>, %arg7: memref<1x128x128xf32, #tpu.memory_space<vmem>>) attributes {dimension_semantics = [#tpu.dimension_semantics<arbitrary>, #tpu.dimension_semantics<parallel>], iteration_bounds = array<i64: 3, 1>, scalar_prefetch = 1 : i64, scratch_operands = 0 : i64, tpu.core_type = #tpu.core_type<tc>, window_params = [{transform_indices = @transform_0, window_bounds = array<i64: 128, 128>}, {transform_indices = @transform_1, window_bounds = array<i64: 1, 128, 128>}, {transform_indices = @transform_2, window_bounds = array<i64: 1, 128, 128>}, {pipeline_mode = #tpu.pipeline_mode<synchronous>, transform_indices = @transform_3, window_bounds = array<i64: 1, 128>}, {transform_indices = @transform_4, window_bounds = array<i64: 1, 128, 128>}]} {
    %c1_i32 = arith.constant 1 : i32
    %0 = arith.muli %arg0, %c1_i32 : i32
    %1 = arith.addi %0, %arg1 : i32
    %2 = arith.index_cast %1 : i32 to index
    %3 = memref.load %arg2[%2] : memref<3xi32, #tpu.memory_space<smem>>
    %c0_i32 = arith.constant 0 : i32
    %4 = arith.cmpi sgt, %3, %c0_i32 : i32
    %5 = arith.extui %4 : i1 to i32
    %c0_i32_0 = arith.constant 0 : i32
    %6 = arith.cmpi ne, %5, %c0_i32_0 : i32
    scf.if %6 {
      %c0 = arith.constant 0 : index
      %c0_2 = arith.constant 0 : index
      %10 = vector.load %arg3[%c0, %c0_2] : memref<128x128xf32, #tpu.memory_space<vmem>>, vector<128x128xf32>
      %c0_3 = arith.constant 0 : index
      %c0_4 = arith.constant 0 : index
      %c0_5 = arith.constant 0 : index
      %11 = vector.load %arg4[%c0_3, %c0_4, %c0_5] : memref<1x128x128xf32, #tpu.memory_space<vmem>>, vector<1x128x128xf32>
      %12 = vector.shape_cast %11 : vector<1x128x128xf32> to vector<128x128xf32>
      %cst = arith.constant dense<0.000000e+00> : vector<128x128xf32>
      %13 = tpu.matmul %10, %12, %cst {dimension_numbers = #tpu.dot_dimension_numbers<[1], [0], [0], [1], [0, 0, 1, 1], [], []>} : vector<128x128xf32>, vector<128x128xf32>, vector<128x128xf32> -> vector<128x128xf32>
      %c0_6 = arith.constant 0 : index
      %c0_7 = arith.constant 0 : index
      %14 = vector.load %arg6[%c0_6, %c0_7] : memref<1x128xf32, #tpu.memory_space<vmem>>, vector<1x128xf32>
      %15 = vector.broadcast %14 : vector<1x128xf32> to vector<128x128xf32>
      %16 = arith.addf %13, %15 : vector<128x128xf32>
      %cst_8 = arith.constant 0.000000e+00 : f32
      %17 = vector.broadcast %cst_8 : f32 to vector<128x128xf32>
      %18 = arith.maximumf %16, %17 : vector<128x128xf32>
      %c0_9 = arith.constant 0 : index
      %c0_10 = arith.constant 0 : index
      %c0_11 = arith.constant 0 : index
      %19 = vector.load %arg5[%c0_9, %c0_10, %c0_11] : memref<1x128x128xf32, #tpu.memory_space<vmem>>, vector<1x128x128xf32>
      %20 = vector.shape_cast %19 : vector<1x128x128xf32> to vector<128x128xf32>
      %cst_12 = arith.constant dense<0.000000e+00> : vector<128x128xf32>
      %21 = tpu.matmul %18, %20, %cst_12 {dimension_numbers = #tpu.dot_dimension_numbers<[1], [0], [0], [1], [0, 0, 1, 1], [], []>} : vector<128x128xf32>, vector<128x128xf32>, vector<128x128xf32> -> vector<128x128xf32>
      %c0_13 = arith.constant 0 : index
      %c0_14 = arith.constant 0 : index
      %c0_15 = arith.constant 0 : index
      %22 = vector.load %arg7[%c0_13, %c0_14, %c0_15] : memref<1x128x128xf32, #tpu.memory_space<vmem>>, vector<1x128x128xf32>
      %23 = vector.shape_cast %22 : vector<1x128x128xf32> to vector<128x128xf32>
      %24 = vector.shape_cast %21 : vector<128x128xf32> to vector<1x128x128xf32>
      tpu.vector_store %arg7[%c0_13, %c0_14, %c0_15], %24 {strides = array<i32>} : memref<1x128x128xf32, #tpu.memory_space<vmem>>, vector<1x128x128xf32>,
    } else {
    }
    %true = arith.constant true
    %7 = arith.xori %4, %true : i1
    %8 = arith.extui %7 : i1 to i32
    %c0_i32_1 = arith.constant 0 : i32
    %9 = arith.cmpi ne, %8, %c0_i32_1 : i32
    scf.if %9 {
      %cst = arith.constant 0.000000e+00 : f32
      %10 = vector.broadcast %cst : f32 to vector<128x128xf32>
      %c0 = arith.constant 0 : index
      %c0_2 = arith.constant 0 : index
      %c0_3 = arith.constant 0 : index
      %11 = vector.load %arg7[%c0, %c0_2, %c0_3] : memref<1x128x128xf32, #tpu.memory_space<vmem>>, vector<1x128x128xf32>
      %12 = vector.shape_cast %11 : vector<1x128x128xf32> to vector<128x128xf32>
      %13 = vector.shape_cast %10 : vector<128x128xf32> to vector<1x128x128xf32>
      tpu.vector_store %arg7[%c0, %c0_2, %c0_3], %13 {strides = array<i32>} : memref<1x128x128xf32, #tpu.memory_space<vmem>>, vector<1x128x128xf32>,
    } else {
    }
    return
  }
  func.func @transform_0(%arg0: i32, %arg1: i32, %arg2: memref<3xi32, #tpu.memory_space<smem>>) -> (i32, i32) {
    %c0_i32 = arith.constant 0 : i32
    %c0_i32_0 = arith.constant 0 : i32
    return %arg1, %c0_i32 : i32, i32
  }
  func.func @transform_1(%arg0: i32, %arg1: i32, %arg2: memref<3xi32, #tpu.memory_space<smem>>) -> (i32, i32, i32) {
    %c0_i32 = arith.constant 0 : i32
    %c0_i32_0 = arith.constant 0 : i32
    %c0_i32_1 = arith.constant 0 : i32
    return %arg0, %c0_i32, %c0_i32_0 : i32, i32, i32
  }
  func.func @transform_2(%arg0: i32, %arg1: i32, %arg2: memref<3xi32, #tpu.memory_space<smem>>) -> (i32, i32, i32) {
    %c0_i32 = arith.constant 0 : i32
    %c0_i32_0 = arith.constant 0 : i32
    %c0_i32_1 = arith.constant 0 : i32
    return %arg0, %c0_i32, %c0_i32_0 : i32, i32, i32
  }
  func.func @transform_3(%arg0: i32, %arg1: i32, %arg2: memref<3xi32, #tpu.memory_space<smem>>) -> (i32, i32) {
    %c0_i32 = arith.constant 0 : i32
    %c0_i32_0 = arith.constant 0 : i32
    %c0_i32_1 = arith.constant 0 : i32
    return %c0_i32, %c0_i32_0 : i32, i32
  }
  func.func @transform_4(%arg0: i32, %arg1: i32, %arg2: memref<3xi32, #tpu.memory_space<smem>>) -> (i32, i32, i32) {
    %c0_i32 = arith.constant 0 : i32
    %c0_i32_0 = arith.constant 0 : i32
    return %arg0, %arg1, %c0_i32 : i32, i32, i32
  }
}

</mosaic_0001>

<bundles_post_ra>
// kernel: tpu_custom_call.1
= control target key start
LH: loop header
LB: loop body
LE: loop exit
PB: predicated region body
PF: predicated region fallthrough
CT: control target
= control target key end

     0   :  { %s1773_s0 = inlined_call_operand.hbm [shape: s32[3], index: 0, kind: input, shape index: {}]   ;;  %s1774_s1 = inlined_call_operand.hbm [shape: f32[128,128], index: 1, kind: input, shape index: {}]   ;;  %s1775_s2 = inlined_call_operand.hbm [shape: f32[3,128,128], index: 2, kind: input, shape index: {}]   ;;  %s1776_s3 = inlined_call_operand.hbm [shape: f32[3,128,128], index: 3, kind: input, shape index: {}]   ;;  %s1777_s4 = inlined_call_operand.vmem [shape: f32[1,128], index: 4, kind: input, shape index: {}]   ;;  %s1778_s5 = inlined_call_operand.hbm [shape: f32[3,128,128], index: 5, kind: output, shape index: {}]  }
   0x1   :  { %s1185_s20 = scalar_lea.hbm %s1773_s0, 16 }
   0x2   :  { %p1186_p0 = scmp.ne.s32.totalorder %s1773_s0, %s1185_s20  ;;  %p1189_p1 = scmp.lt.u32.totalorder %s1185_s20, %s1773_s0 }
   0x4   :  { %p1191_p2 = pnand %p1189_p1, %p1186_p0 }
   0x6   :  { %1194 = shalt.err (!%p1191_p2)  }
   0x7   :  { %s1373_s25 = smov [#allocation3]  }
   0x8   :  { %11 = dma.hbm_to_smem %s1773_s0, 16, %s1373_s25, [#allocation2] }
   0x9   :  { %1335 = dma.done.wait [#allocation2], 16 }
   0xa   :  { %1336 = vsyncadd [#allocation2], 4294967280 }
   0xb   :  { %13 = sfence }
   0xc   :  { %14 = vsyncpa [#allocation5], 0 }
   0xd   :  { %15 = vsyncpa [#allocation8], 0 }
   0xe   :  { %17 = vsyncpa [#allocation8 + $0x1], 0 }
   0xf   :  { %18 = vsyncpa [#allocation6], 0 }
  0x10   :  { %20 = vsyncpa [#allocation6 + $0x1], 0  ;;  %s1425_s28 = smov 0   ;;  %s1427_s29 = smov 0  }
  0x11   :  { %s1429_s30 = smov 0   ;;  %s1431_s6 = smov 0  }
  0x12   :  { %s1433_s7 = smov 0   ;;  %s1435_s8 = smov 0  }
  0x13 LB: > { %s38_s0 = sadd.s32 1, %s1367_s7  ;;  %s71_s9 = sadd.s32 1, %s1359_s30  ;;  %s1371_s8 = sphi %s1435_s8, %s26_s8   ;;  %s1367_s7 = sphi %s1433_s7, %s1805_s7   ;;  %s1363_s6 = sphi %s1431_s6, %s1804_s6   ;;  %s1359_s30 = sphi %s1429_s30, %s1803_s30   ;;  %s1355_s29 = sphi %s1427_s29, %s1802_s29   ;;  %s1351_s28 = sphi %s1425_s28, %s1801_s28  }
  0x14   : > { %p40_p3 = scmp.ge.s32.totalorder %s38_s0, 3  ;;  %p78_p4 = scmp.ne.s32.totalorder %s1359_s30, %s1355_s29 }
  0x15   : > { %p79_p5 = scmp.eq.s32.totalorder %s1371_s8, 0  ;;  %p1127_p8 = scmp.lt.s32.totalorder %s1371_s8, 3 }
  0x16   : > { %s1807_s0 = smov (%p40_p3, %s38_s0), 0  ;;  %s202_s12 = sand.u32 1, %s1371_s8  }
  0x17   : > { %p1465_p6 = por %p79_p5, %p78_p4  ;;  %s68_s11 = ssub.s32 %s1367_s7, %s1807_s0 }
  0x18   : > { %p69_p7 = scmp.eq.s32.totalorder %s68_s11, 0  ;;  %s204_s13 = sand.u32 1, %s1359_s30  }
  0x19   : > { %s1477_s15 = sshll.u32 %s204_s13, 7  ;;  %s858_s16 = sshll.u32 %s1367_s7, 11 }
  0x1a   : > { %s1475_s14 = scalar_select %p69_p7, %s1359_s30, %s71_s9  }
  0x1b   : > { %s1483_s19 = scalar_lea.hbm %s1775_s2, %s858_s16  ;;  %s206_s20 = scalar_lea.vmem [#allocation7], %s1477_s15 }
  0x1c   : > { %s213_s21 = sshll.u32 %s206_s20, 4  ;;  %p1490_p9 = pnand %p1127_p8, %p1465_p6  ;;  %s1486_s21 = int_to_ptr.vmem [resolvable:$true] %s213_s21 }
  0x1d   : > { %s1497_s25 = scalar_lea.hbm %s1776_s3, %s858_s16  ;;  %s1499_s26 = scalar_lea.sflag [#allocation8], %s202_s12 }
  0x1e   : > { %s1195_s27 = scalar_lea.hbm %s1483_s19, 2048  ;;  %p1197_p11 = pneg %p1490_p9 }
  0x1f   : > { %p1196_p10 = scmp.ne.s32.totalorder %s1483_s19, %s1195_s27  ;;  %s1200_s11 = scalar_lea.hbm %s1775_s2, 6144 }
  0x20   : > { %p1201_p0 = scmp.lt.u32.totalorder %s1483_s19, %s1775_s2  ;;  %p1202_p1 = scmp.lt.u32.totalorder %s1200_s11, %s1195_s27 }
  0x21   : > { %p1198_p12 = pnand %p1197_p11, %p1196_p10  ;;  %p1204_p3 = scmp.lt.u32.totalorder %s1195_s27, %s1483_s19 }
  0x22   : > { %p1203_p2 = por %p1202_p1, %p1201_p0 }
  0x23   : > { %p1199_p13 = pneg %p1198_p12 }
  0x24   : > { %p1205_p5 = por %p1204_p3, %p1203_p2 }
  0x26   : > { %p1206_p6 = pnand %p1205_p5, %p1199_p13 }
  0x28   : > { %1209 = shalt.err (!%p1206_p6)
}
  0x29   : > { %s1210_s12 = scalar_lea.vmem %s1486_s21, 2048  ;;  %s1374_s16 = smov [#allocation7]  }
  0x2a   : > { %p1211_p7 = scmp.ne.s32.totalorder %s1486_s21, %s1210_s12  ;;  %s1215_s18 = sshll.u32 %s1374_s16, 4  ;;  %s1216_s18 = int_to_ptr.vmem [resolvable:$false] %s1215_s18 }
  0x2b   : > { %s1217_s20 = scalar_lea.vmem %s1216_s18, 4096  ;;  %p1218_p12 = scmp.lt.s32.totalorder %s1486_s21, %s1216_s18 }
  0x2c   : > { %p1213_p8 = pnand %p1211_p7, %p1197_p11  ;;  %p1219_p0 = scmp.lt.s32.totalorder %s1217_s20, %s1210_s12 }
  0x2e   : > { %p1214_p10 = pneg %p1213_p8  ;;  %p1220_p1 = por %p1219_p0, %p1218_p12 }
  0x30   : > { %p1221_p2 = pnand %p1220_p1, %p1214_p10 }
  0x32   : > { %1224 = shalt.err (!%p1221_p2)
}
  0x33   : > { %s1779_s23 = smov 128   ;;  %s1376_s24 = smov 8  }
  0x34   : > { %1118 = dma.hbm_to_vmem [thread:$0]  (!%p1490_p9), %s1483_s19, 2048, %s1486_s21, %s1499_s26, %s1779_s23, %s1779_s23, %s1376_s24  }
  0x35   : > { %s227_s27 = scalar_lea.vmem [#allocation9], %s1477_s15  ;;  %s1532_s10 = sadd.s32 4294967295, %s1371_s8  }
  0x36   : > { %s234_s9 = sshll.u32 %s227_s27, 4  ;;  %s835_s11 = sadd.s32 4294967294, %s1371_s8   ;;  %s1558_s9 = int_to_ptr.vmem [resolvable:$true] %s234_s9 }
  0x37   : > { %p84_p13 = scmp.ne.s32.totalorder %s1355_s29, %s1351_s28  ;;  %p1781_p3 = scmp.eq.s32.totalorder %s1532_s10, 0 }
  0x38   : > { %p157_p5 = scmp.eq.s32.totalorder %s1532_s10, 2  ;;  %p163_p6 = scmp.eq.s32.totalorder %s835_s11, 2 }
  0x39   : > { %p836_p7 = scmp.ge.s32.totalorder %s1371_s8, 1  ;;  %p1542_p8 = por %p1781_p3, %p84_p13 }
  0x3a   : > { %p1549_p10 = por %p157_p5, %p78_p4  ;;  %p1553_p12 = por %p163_p6, %p84_p13 }
  0x3b   : > { %s1787_s19 = scalar_select %p1542_p8, 1, 0 }
  0x3c   : > { %s1788_s15 = scalar_select %p1549_p10, 1, 0 }
  0x3d   : > { %s1789_s21 = scalar_select %p1553_p12, 1, 0 }
  0x3e   : > { %p170_p0 = scmp.lt.s32.totalorder %s1371_s8, 4  ;;  %s1377_s17 = smov [#allocation4]  }
  0x3f   : > { %s1564_s12 = sshll.u32 %s1377_s17, 4  ;;  %s1225_s16 = scalar_lea.hbm %s1497_s25, 2048  ;;  %s186_s12 = int_to_ptr.vmem [resolvable:$true] %s1564_s12 }
  0x40   : > { %p1560_p1 = pnand %p836_p7, %p170_p0  ;;  %p1226_p2 = scmp.ne.s32.totalorder %s1497_s25, %s1225_s16 }
  0x41   : > { %s1230_s27 = scalar_lea.hbm %s1776_s3, 6144  ;;  %p1231_p6 = scmp.lt.u32.totalorder %s1497_s25, %s1776_s3 }
  0x42   : > { %s1790_s13 = scalar_select %p1560_p1, 1, 0 }
  0x43   : > { %p1228_p13 = pnand %p1226_p2, %p1197_p11  ;;  %p1232_p7 = scmp.lt.u32.totalorder %s1230_s27, %s1225_s16 }
  0x44   : > { %p1234_p3 = scmp.lt.u32.totalorder %s1225_s16, %s1497_s25 }
  0x45   : > { %p1229_p5 = pneg %p1228_p13  ;;  %p1233_p0 = por %p1232_p7, %p1231_p6 }
  0x47   : > { %p1235_p12 = por %p1234_p3, %p1233_p0 }
  0x49   : > { %p1236_p10 = pnand %p1235_p12, %p1229_p5 }
  0x4b   : > { %1239 = shalt.err (!%p1236_p10)
}
  0x4c   : > { %s1240_s17 = scalar_lea.vmem %s1558_s9, 2048  ;;  %s1378_s18 = smov [#allocation9]  }
  0x4d   : > { %p1241_p2 = scmp.ne.s32.totalorder %s1558_s9, %s1240_s17  ;;  %s1245_s20 = sshll.u32 %s1378_s18, 4  ;;  %s1246_s20 = int_to_ptr.vmem [resolvable:$false] %s1245_s20 }
  0x4e   : > { %s1247_s23 = scalar_lea.vmem %s1246_s20, 4096  ;;  %p1248_p8 = scmp.lt.s32.totalorder %s1558_s9, %s1246_s20 }
  0x4f   : > { %p1243_p13 = pnand %p1241_p2, %p1197_p11  ;;  %p1249_p6 = scmp.lt.s32.totalorder %s1247_s23, %s1240_s17 }
  0x51   : > { %p1244_p4 = pneg %p1243_p13  ;;  %p1250_p7 = por %p1249_p6, %p1248_p8 }
  0x53   : > { %p1251_p3 = pnand %p1250_p7, %p1244_p4 }
  0x55   : > { %1254 = shalt.err (!%p1251_p3)
}
  0x56   : > { %s1791_s16 = smov 128   ;;  %p1792_p11 = scmp.eq.s32.totalorder %s1532_s10, 0 }
  0x57   : > { %1121 = dma.hbm_to_vmem [thread:$0]  (!%p1490_p9), %s1497_s25, 2048, %s1558_s9, %s1499_s26, %s1791_s16, %s1791_s16, %s1376_s24  }
  0x58   : > { %p1793_p10 = pneg %p1560_p1  ;;  %s1255_s17 = scalar_lea.hbm %s1774_s1, 2048 }
  0x59   : > { %p1256_p8 = scmp.ne.s32.totalorder %s1774_s1, %s1255_s17  ;;  %p1262_p0 = scmp.lt.u32.totalorder %s1255_s17, %s1774_s1 }
  0x5a   : > { %p1601_p12 = pnand %p1793_p10, %p1792_p11 }
  0x5c   : > { %p1257_p4 = pneg %p1601_p12 }
  0x5e   : > { %p1258_p9 = pnand %p1257_p4, %p1256_p8 }
  0x60   : > { %p1259_p5 = pneg %p1258_p9 }
  0x62   : > { %p1264_p2 = pnand %p1262_p0, %p1259_p5 }
  0x64   : > { %1267 = shalt.err (!%p1264_p2)
}
  0x65   : > { %s1268_s9 = scalar_lea.vmem %s186_s12, 2048  ;;  %p1276_p3 = scmp.lt.s32.totalorder %s186_s12, %s186_s12 }
  0x66   : > { %p1269_p13 = scmp.ne.s32.totalorder %s186_s12, %s1268_s9  ;;  %p1277_p11 = scmp.lt.s32.totalorder %s1268_s9, %s1268_s9 }
  0x68   : > { %p1271_p6 = pnand %p1269_p13, %p1257_p4  ;;  %p1278_p10 = por %p1277_p11, %p1276_p3 }
  0x6a   : > { %p1272_p7 = pneg %p1271_p6 }
  0x6c   : > { %p1279_p1 = pnand %p1278_p10, %p1272_p7 }
  0x6e   : > { %1282 = shalt.err (!%p1279_p1)
}
  0x6f   : > { %1114 = dma.hbm_to_vmem [thread:$0]  (!%p1601_p12), %s1774_s1, 2048, %s186_s12, [#allocation5], %s1791_s16, %s1791_s16, %s1376_s24  }
  0x70   : > { %p1795_p8 = scmp.ne.s32.totalorder %s1790_s13, 0 }
  0x71   : > { %p1796_p4 = scmp.eq.s32.totalorder (!%p1795_p8), %s1532_s10, 0 }
  0x72   : > { %246 = sbr.rel (%p1795_p8) target bundleno = 665 (0x299), region = 36 }
  0x79   : > { %1338 = dma.done.wait (%p1796_p4), [#allocation5], 2048   ;;  %p1797_p9 = pmov %p1796_p4 }
  0x7a   : > { %s252_s27 = sand.u32 1, %s1532_s10   ;;  %s254_s22 = sand.u32 1, %s1355_s29  }
  0x7b   : > { %1340 = vsyncadd (%p1797_p9), [#allocation5], 4294965248  ;;  %s847_s17 = sshll.u32 %s254_s22, 7  ;;  %s253_s18 = scalar_lea.sflag [#allocation8], %s252_s27 }
  0x7c   : > { %s1634_s20 = scalar_lea.vmem [#allocation7], %s847_s17  ;;  %p1798_p1 = scmp.ne.s32.totalorder %s1787_s19, 0 }
  0x7e   : > { %1342 = dma.done.wait (%p1798_p1), %s253_s18, 4096  }
  0x7f   : > { %1344 = vsyncadd (%p1798_p1), %s253_s18, 4294963200  ;;  %s1641_s24 = sld [smem:[#allocation3 + %s1363_s6]]  ;;  %s1643_s13 = scalar_lea.vmem [#allocation9], %s847_s17 }
  0x80   : > { %s1645_s12 = scalar_lea.vmem [#allocation10], %s847_s17 }
  0x85   : > { %p850_p12 = scmp.le.s32.totalorder %s1641_s24, 0 }
  0x86   : > { %v319_v0 = vld [vmem:[%s1634_s20] sm:$0xff] (!%p850_p12)  ;;  %v320_v1 = vld [vmem:[%s1634_s20 + $0x8] sm:$0xff] (!%p850_p12)  ;;  %v321_v2 = vld [vmem:[%s1634_s20 + $0x10] sm:$0xff] (!%p850_p12) }
  0x87   : > { %302 = sbr.rel (%p850_p12) target bundleno = 629 (0x275), region = 52  ;;  %v1037_v3 = vpack.c.bf16 (!%p850_p12), %v320_v1, %v319_v0  ;;  %v322_v4 = vld [vmem:[%s1634_s20 + $0x18] sm:$0xff] (!%p850_p12)  ;;  %v323_v6 = vld [vmem:[%s1634_s20 + $0x20] sm:$0xff] (!%p850_p12)  ;;  %v324_v7 = vld [vmem:[%s1634_s20 + $0x28] sm:$0xff] (!%p850_p12) }
  0x88   : > { %v1041_v5 = vpack.c.bf16 (!%p850_p12), %v322_v4, %v321_v2  ;;  %v1045_v8 = vpack.c.bf16 (!%p850_p12), %v324_v7, %v323_v6  ;;  %v303_v9 = vld [vmem:[#allocation4] sm:$0xff] (!%p850_p12)  ;;  %v325_v10 = vld [vmem:[%s1634_s20 + $0x30] sm:$0xff] (!%p850_p12)  ;;  %v326_v11 = vld [vmem:[%s1634_s20 + $0x38] sm:$0xff] (!%p850_p12) }
  0x89   : > { %1038 = vmatprep.subr.bf16.mxu0 (!%p850_p12), %v1037_v3  ;;  %957 = vmatprep.mubr.f32.mxu0 (!%p850_p12), %v303_v9  ;;  %v1049_v12 = vpack.c.bf16 (!%p850_p12), %v326_v11, %v325_v10  ;;  %v327_v13 = vld [vmem:[%s1634_s20 + $0x40] sm:$0xff] (!%p850_p12)  ;;  %v328_v14 = vld [vmem:[%s1634_s20 + $0x48] sm:$0xff] (!%p850_p12)  ;;  %v505_v17 = vld [vmem:[%s1643_s13 + $0x10] sm:$0xff] (!%p850_p12) }
  0x8a   : > { %1040 = vmatpush3.bf16.msra.mxu0 (!%p850_p12), %v1037_v3  ;;  %v503_v15 = vld [vmem:[%s1643_s13] sm:$0xff] (!%p850_p12)  ;;  %v504_v16 = vld [vmem:[%s1643_s13 + $0x8] sm:$0xff] (!%p850_p12)  ;;  %v506_v18 = vld [vmem:[%s1643_s13 + $0x18] sm:$0xff] (!%p850_p12)  ;;  %v1053_v21 = vpack.c.bf16 (!%p850_p12), %v328_v14, %v327_v13 }
  0x8b   : > { %1042 = vmatprep.subr.bf16.mxu0 (!%p850_p12), %v1041_v5  ;;  %v1069_v19 = vpack.c.bf16 (!%p850_p12), %v504_v16, %v503_v15  ;;  %v1073_v20 = vpack.c.bf16 (!%p850_p12), %v506_v18, %v505_v17  ;;  %v507_v22 = vld [vmem:[%s1643_s13 + $0x20] sm:$0xff] (!%p850_p12)  ;;  %v508_v23 = vld [vmem:[%s1643_s13 + $0x28] sm:$0xff] (!%p850_p12)  ;;  %v329_v24 = vld [vmem:[%s1634_s20 + $0x50] sm:$0xff] (!%p850_p12) }
  0x8c   : > { %v330_v25 = vld [vmem:[%s1634_s20 + $0x58] sm:$0xff] (!%p850_p12)  ;;  %v1077_v26 = vpack.c.bf16 (!%p850_p12), %v508_v23, %v507_v22  ;;  %v509_v28 = vld [vmem:[%s1643_s13 + $0x30] sm:$0xff] (!%p850_p12)  ;;  %v331_v30 = vld [vmem:[%s1634_s20 + $0x60] sm:$0xff] (!%p850_p12) }
  0x8d   : > { %1070 = vmatprep.subr.bf16.mxu1 (!%p850_p12), %v1069_v19  ;;  %v1057_v27 = vpack.c.bf16 (!%p850_p12), %v330_v25, %v329_v24  ;;  %v510_v29 = vld [vmem:[%s1643_s13 + $0x38] sm:$0xff] (!%p850_p12)  ;;  %v332_v31 = vld [vmem:[%s1634_s20 + $0x68] sm:$0xff] (!%p850_p12)  ;;  %v511_v34 = vld [vmem:[%s1643_s13 + $0x40] sm:$0xff] (!%p850_p12) }
  0x8e   : > { %1044 = vmatpush3.bf16.msra.mxu0 %v1041_v5  ;;  %1072 = vmatpush3.bf16.msra.mxu1 %v1069_v19  ;;  %v1081_v32 = vpack.c.bf16 %v510_v29, %v509_v28  ;;  %v1061_v33 = vpack.c.bf16 %v332_v31, %v331_v30  ;;  %v512_v35 = vld [vmem:[%s1643_s13 + $0x48] sm:$0xff]  ;;  %v333_v36 = vld [vmem:[%s1634_s20 + $0x70] sm:$0xff]  ;;  %v334_v37 = vld [vmem:[%s1634_s20 + $0x78] sm:$0xff] }
  0x8f   : > { %1046 = vmatprep.subr.bf16.mxu0 %v1045_v8  ;;  %1074 = vmatprep.subr.bf16.mxu1 %v1073_v20  ;;  %v1085_v38 = vpack.c.bf16 %v512_v35, %v511_v34  ;;  %v1065_v39 = vpack.c.bf16 %v334_v37, %v333_v36  ;;  %v513_v40 = vld [vmem:[%s1643_s13 + $0x50] sm:$0xff]  ;;  %v514_v41 = vld [vmem:[%s1643_s13 + $0x58] sm:$0xff]  ;;  %v515_v43 = vld [vmem:[%s1643_s13 + $0x60] sm:$0xff] }
  0x90   : > { %v1089_v42 = vpack.c.bf16 %v514_v41, %v513_v40  ;;  %v516_v44 = vld [vmem:[%s1643_s13 + $0x68] sm:$0xff]  ;;  %v305_v47 = vld [vmem:[#allocation4 + $0x10] sm:$0xff]  ;;  %v306_v48 = vld [vmem:[#allocation4 + $0x18] sm:$0xff] }
  0x91   : > { %v304_v45 = vld [vmem:[#allocation4 + $0x8] sm:$0xff]  ;;  %v1093_v46 = vpack.c.bf16 %v516_v44, %v515_v43  ;;  %v307_v49 = vld [vmem:[#allocation4 + $0x20] sm:$0xff]  ;;  %v309_v51 = vld [vmem:[#allocation4 + $0x30] sm:$0xff] }
  0x92   : > { %1048 = vmatpush3.bf16.msra.mxu0 %v1045_v8  ;;  %1076 = vmatpush3.bf16.msra.mxu1 %v1073_v20  ;;  %v308_v50 = vld [vmem:[#allocation4 + $0x28] sm:$0xff]  ;;  %v310_v52 = vld [vmem:[#allocation4 + $0x38] sm:$0xff]  ;;  %v311_v53 = vld [vmem:[#allocation4 + $0x40] sm:$0xff] }
  0x93   : > { %1050 = vmatprep.subr.bf16.mxu0 %v1049_v12  ;;  %1078 = vmatprep.subr.bf16.mxu1 %v1077_v26  ;;  %v312_v54 = vld [vmem:[#allocation4 + $0x48] sm:$0xff]  ;;  %v313_v55 = vld [vmem:[#allocation4 + $0x50] sm:$0xff]  ;;  %v314_v56 = vld [vmem:[#allocation4 + $0x58] sm:$0xff] }
  0x94   : > { %v315_v57 = vld [vmem:[#allocation4 + $0x60] sm:$0xff]  ;;  %v316_v58 = vld [vmem:[#allocation4 + $0x68] sm:$0xff]  ;;  %v317_v59 = vld [vmem:[#allocation4 + $0x70] sm:$0xff] }
  0x95   : > { %v318_v60 = vld [vmem:[#allocation4 + $0x78] sm:$0xff]  ;;  %v517_v61 = vld [vmem:[%s1643_s13 + $0x70] sm:$0xff]  ;;  %v851_v0 = vld [vmem:[%s1777_s4] ss:$0 sm:$0xff] }
  0x96   : > { %1052 = vmatpush3.bf16.msra.mxu0 %v1049_v12  ;;  %1080 = vmatpush3.bf16.msra.mxu1 %v1077_v26  ;;  %v518_v62 = vld [vmem:[%s1643_s13 + $0x78] sm:$0xff] }
  0x97   : > { %1054 = vmatprep.subr.bf16.mxu0 %v1053_v21  ;;  %1082 = vmatprep.subr.bf16.mxu1 %v1081_v32  ;;  %v1097_v63 = vpack.c.bf16 %v518_v62, %v517_v61 }
  0x9a   : > { %1056 = vmatpush3.bf16.msra.mxu0 %v1053_v21  ;;  %1084 = vmatpush3.bf16.msra.mxu1 %v1081_v32 }
  0x9b   : > { %1058 = vmatprep.subr.bf16.mxu0 %v1057_v27  ;;  %1086 = vmatprep.subr.bf16.mxu1 %v1085_v38 }
  0x9e   : > { %1060 = vmatpush3.bf16.msra.mxu0 %v1057_v27  ;;  %1088 = vmatpush3.bf16.msra.mxu1 %v1085_v38 }
  0x9f   : > { %1062 = vmatprep.subr.bf16.mxu0 %v1061_v33  ;;  %1090 = vmatprep.subr.bf16.mxu1 %v1089_v42 }
  0xa2   : > { %1064 = vmatpush3.bf16.msra.mxu0 %v1061_v33  ;;  %1092 = vmatpush3.bf16.msra.mxu1 %v1089_v42 }
  0xa3   : > { %1066 = vmatprep.subr.bf16.mxu0 %v1065_v39  ;;  %1094 = vmatprep.subr.bf16.mxu1 %v1093_v46 }
  0xa6   : > { %1068 = vmatpush3.bf16.msra.mxu0 %v1065_v39  ;;  %1096 = vmatpush3.bf16.msra.mxu1 %v1093_v46 }
  0xa7   : > { %1098 = vmatprep.subr.bf16.mxu1 %v1097_v63 }
  0xa9   : > { %958 = vmatmul.mubr.f32.vlgmr.msra.gmra.mrb[0].mxu0 %v304_v45 }
  0xaa   : > { %960 = vmatprep.mubr.f32.mxu0 %v305_v47  ;;  %1100 = vmatpush3.bf16.msra.mxu1 %v1097_v63 }
  0xad   : > { %961 = vmatmul.mubr.f32.gmra.mrb[2].mxu0 %v306_v48 }
  0xae   : > { %963 = vmatprep.mubr.f32.mxu0 %v307_v49 }
  0xb1   : > { %964 = vmatmul.mubr.f32.gmra.mrb[4].mxu0 %v308_v50 }
  0xb2   : > { %966 = vmatprep.mubr.f32.mxu0 %v309_v51 }
  0xb5   : > { %967 = vmatmul.mubr.f32.gmra.mrb[6].mxu0 %v310_v52 }
  0xb6   : > { %969 = vmatprep.mubr.f32.mxu0 %v311_v53 }
  0xb9   : > { %970 = vmatmul.mubr.f32.gmra.mrb[8].mxu0 %v312_v54 }
  0xba   : > { %972 = vmatprep.mubr.f32.mxu0 %v313_v55 }
  0xbd   : > { %973 = vmatmul.mubr.f32.gmra.mrb[10].mxu0 %v314_v56 }
  0xbe   : > { %975 = vmatprep.mubr.f32.mxu0 %v315_v57 }
  0xc1   : > { %976 = vmatmul.mubr.f32.gmra.mrb[12].mxu0 %v316_v58 }
  0xc2   : > { %978 = vmatprep.mubr.f32.mxu0 %v317_v59 }
  0xc5   : > { %979 = vmatmul.mubr.f32.gmra.mrb[14].mxu0 %v318_v60 }
 0x17c   : > { %v959_v1 = vpop.f32.mrb[0].mxu0 }
 0x17d   : > { %v414_v2 = vadd.f32 %v959_v1, %v851_v0  ;;  %v408_v3 = vpop.f32.mrb[1].mxu0 }
 0x17e   : > { %v409_v4 = vadd.f32 %v851_v0, %v408_v3 }
 0x17f   : > { %v488_v7 = vmax.f32 %v414_v2, 0.0 }
 0x180   : > { %v962_v5 = vpop.f32.mrb[2].mxu0  ;;  %v487_v6 = vmax.f32 %v409_v4, 0.0 }
 0x181   : > { %v424_v8 = vadd.f32 %v962_v5, %v851_v0  ;;  %v418_v9 = vpop.f32.mrb[3].mxu0 }
 0x182   : > { %v419_v10 = vadd.f32 %v851_v0, %v418_v9  ;;  %1013 = vmatprep.mubr.f32.mxu1 %v487_v6 }
 0x183   : > { %1014 = vmatmul.mubr.f32.vlgmr.msra.gmra.mrb[0].mxu1 %v488_v7  ;;  %v490_v13 = vmax.f32 %v424_v8, 0.0 }
 0x184   : > { %v489_v11 = vmax.f32 %v419_v10, 0.0  ;;  %v965_v12 = vpop.f32.mrb[4].mxu0 }
 0x185   : > { %v434_v14 = vadd.f32 %v965_v12, %v851_v0  ;;  %v428_v15 = vpop.f32.mrb[5].mxu0 }
 0x186   : > { %v429_v16 = vadd.f32 %v851_v0, %v428_v15  ;;  %1016 = vmatprep.mubr.f32.mxu1 %v489_v11 }
 0x187   : > { %1017 = vmatmul.mubr.f32.gmra.mrb[2].mxu1 %v490_v13  ;;  %v492_v19 = vmax.f32 %v434_v14, 0.0 }
 0x188   : > { %v491_v17 = vmax.f32 %v429_v16, 0.0  ;;  %v968_v18 = vpop.f32.mrb[6].mxu0 }
 0x189   : > { %v444_v20 = vadd.f32 %v968_v18, %v851_v0  ;;  %v438_v21 = vpop.f32.mrb[7].mxu0 }
 0x18a   : > { %v439_v22 = vadd.f32 %v851_v0, %v438_v21  ;;  %1019 = vmatprep.mubr.f32.mxu1 %v491_v17 }
 0x18b   : > { %1020 = vmatmul.mubr.f32.gmra.mrb[4].mxu1 %v492_v19  ;;  %v494_v25 = vmax.f32 %v444_v20, 0.0 }
 0x18c   : > { %v493_v23 = vmax.f32 %v439_v22, 0.0  ;;  %v971_v24 = vpop.f32.mrb[8].mxu0 }
 0x18d   : > { %v454_v26 = vadd.f32 %v971_v24, %v851_v0  ;;  %v448_v27 = vpop.f32.mrb[9].mxu0 }
 0x18e   : > { %v449_v28 = vadd.f32 %v851_v0, %v448_v27  ;;  %1022 = vmatprep.mubr.f32.mxu1 %v493_v23 }
 0x18f   : > { %1023 = vmatmul.mubr.f32.gmra.mrb[6].mxu1 %v494_v25  ;;  %v496_v31 = vmax.f32 %v454_v26, 0.0 }
 0x190   : > { %v495_v29 = vmax.f32 %v449_v28, 0.0  ;;  %v974_v30 = vpop.f32.mrb[10].mxu0 }
 0x191   : > { %v464_v32 = vadd.f32 %v974_v30, %v851_v0  ;;  %v458_v33 = vpop.f32.mrb[11].mxu0 }
 0x192   : > { %v459_v34 = vadd.f32 %v851_v0, %v458_v33  ;;  %1025 = vmatprep.mubr.f32.mxu1 %v495_v29 }
 0x193   : > { %1026 = vmatmul.mubr.f32.gmra.mrb[8].mxu1 %v496_v31  ;;  %v498_v37 = vmax.f32 %v464_v32, 0.0 }
 0x194   : > { %v497_v35 = vmax.f32 %v459_v34, 0.0  ;;  %v977_v36 = vpop.f32.mrb[12].mxu0 }
 0x195   : > { %v474_v38 = vadd.f32 %v977_v36, %v851_v0  ;;  %v468_v39 = vpop.f32.mrb[13].mxu0 }
 0x196   : > { %v469_v40 = vadd.f32 %v851_v0, %v468_v39  ;;  %1028 = vmatprep.mubr.f32.mxu1 %v497_v35 }
 0x197   : > { %1029 = vmatmul.mubr.f32.gmra.mrb[10].mxu1 %v498_v37  ;;  %v500_v43 = vmax.f32 %v474_v38, 0.0 }
 0x198   : > { %v499_v41 = vmax.f32 %v469_v40, 0.0  ;;  %v980_v42 = vpop.f32.mrb[14].mxu0 }
 0x199   : > { %v484_v44 = vadd.f32 %v980_v42, %v851_v0  ;;  %v478_v45 = vpop.f32.mrb[15].mxu0 }
 0x19a   : > { %v479_v46 = vadd.f32 %v851_v0, %v478_v45  ;;  %1031 = vmatprep.mubr.f32.mxu1 %v499_v41 }
 0x19b   : > { %1032 = vmatmul.mubr.f32.gmra.mrb[12].mxu1 %v500_v43  ;;  %v502_v48 = vmax.f32 %v484_v44, 0.0 }
 0x19c   : > { %v501_v47 = vmax.f32 %v479_v46, 0.0 }
 0x19e   : > { %1034 = vmatprep.mubr.f32.mxu1 %v501_v47 }
 0x19f   : > { %1035 = vmatmul.mubr.f32.gmra.mrb[14].mxu1 %v502_v48 }
 0x256   : > { %v1015_v49 = vpop.f32.mrb[0].mxu1 }
 0x257   : > { %665 = vst [vmem:[%s1645_s12 + $0x8] sm:$0xff] %v1015_v49  ;;  %v585_v50 = vpop.f32.mrb[1].mxu1 }
 0x258   : > { %664 = vst [vmem:[%s1645_s12] sm:$0xff] %v585_v50 }
 0x25a   : > { %v1018_v51 = vpop.f32.mrb[2].mxu1 }
 0x25b   : > { %667 = vst [vmem:[%s1645_s12 + $0x18] sm:$0xff] %v1018_v51  ;;  %v595_v52 = vpop.f32.mrb[3].mxu1 }
 0x25c   : > { %666 = vst [vmem:[%s1645_s12 + $0x10] sm:$0xff] %v595_v52 }
 0x25e   : > { %v1021_v53 = vpop.f32.mrb[4].mxu1 }
 0x25f   : > { %669 = vst [vmem:[%s1645_s12 + $0x28] sm:$0xff] %v1021_v53  ;;  %v605_v54 = vpop.f32.mrb[5].mxu1 }
 0x260   : > { %668 = vst [vmem:[%s1645_s12 + $0x20] sm:$0xff] %v605_v54 }
 0x262   : > { %v1024_v55 = vpop.f32.mrb[6].mxu1 }
 0x263   : > { %671 = vst [vmem:[%s1645_s12 + $0x38] sm:$0xff] %v1024_v55  ;;  %v615_v56 = vpop.f32.mrb[7].mxu1 }
 0x264   : > { %670 = vst [vmem:[%s1645_s12 + $0x30] sm:$0xff] %v615_v56 }
 0x266   : > { %v1027_v57 = vpop.f32.mrb[8].mxu1 }
 0x267   : > { %673 = vst [vmem:[%s1645_s12 + $0x48] sm:$0xff] %v1027_v57  ;;  %v625_v58 = vpop.f32.mrb[9].mxu1 }
 0x268   : > { %672 = vst [vmem:[%s1645_s12 + $0x40] sm:$0xff] %v625_v58 }
 0x26a   : > { %v1030_v59 = vpop.f32.mrb[10].mxu1 }
 0x26b   : > { %675 = vst [vmem:[%s1645_s12 + $0x58] sm:$0xff] %v1030_v59  ;;  %v635_v60 = vpop.f32.mrb[11].mxu1 }
 0x26c   : > { %674 = vst [vmem:[%s1645_s12 + $0x50] sm:$0xff] %v635_v60 }
 0x26e   : > { %v1033_v61 = vpop.f32.mrb[12].mxu1 }
 0x26f   : > { %677 = vst [vmem:[%s1645_s12 + $0x68] sm:$0xff] %v1033_v61  ;;  %v645_v62 = vpop.f32.mrb[13].mxu1 }
 0x270   : > { %676 = vst [vmem:[%s1645_s12 + $0x60] sm:$0xff] %v645_v62 }
 0x272   : > { %v1036_v63 = vpop.f32.mrb[14].mxu1 }
 0x273   : > { %679 = vst [vmem:[%s1645_s12 + $0x78] sm:$0xff] %v1036_v63  ;;  %v655_v0 = vpop.f32.mrb[15].mxu1 }
 0x274   : > { %678 = vst [vmem:[%s1645_s12 + $0x70] sm:$0xff] %v655_v0 }
 0x275 PF: > { %p852_p5 = scmp.gt.s32.totalorder %s1641_s24, 0 }
 0x276   : > { %v1379_v1 = vmov (!%p852_p5), 0.0  }
 0x277   : > { %683 = sbr.rel (%p852_p5) target bundleno = 639 (0x27f), region = 56  ;;  %684 = vst [vmem:[%s1645_s12] sm:$0xff] (!%p852_p5), %v1379_v1  ;;  %685 = vst [vmem:[%s1645_s12 + $0x8] sm:$0xff] (!%p852_p5), %v1379_v1 }
 0x278   : > { %686 = vst [vmem:[%s1645_s12 + $0x10] sm:$0xff] (!%p852_p5), %v1379_v1  ;;  %687 = vst [vmem:[%s1645_s12 + $0x18] sm:$0xff] (!%p852_p5), %v1379_v1 }
 0x279   : > { %688 = vst [vmem:[%s1645_s12 + $0x20] sm:$0xff] (!%p852_p5), %v1379_v1  ;;  %689 = vst [vmem:[%s1645_s12 + $0x28] sm:$0xff] (!%p852_p5), %v1379_v1 }
 0x27a   : > { %690 = vst [vmem:[%s1645_s12 + $0x30] sm:$0xff] (!%p852_p5), %v1379_v1  ;;  %691 = vst [vmem:[%s1645_s12 + $0x38] sm:$0xff] (!%p852_p5), %v1379_v1 }
 0x27b   : > { %692 = vst [vmem:[%s1645_s12 + $0x40] sm:$0xff] (!%p852_p5), %v1379_v1  ;;  %693 = vst [vmem:[%s1645_s12 + $0x48] sm:$0xff] (!%p852_p5), %v1379_v1 }
 0x27c   : > { %694 = vst [vmem:[%s1645_s12 + $0x50] sm:$0xff] (!%p852_p5), %v1379_v1  ;;  %695 = vst [vmem:[%s1645_s12 + $0x58] sm:$0xff] (!%p852_p5), %v1379_v1 }
 0x27d   : > { %696 = vst [vmem:[%s1645_s12 + $0x60] sm:$0xff] (!%p852_p5), %v1379_v1  ;;  %697 = vst [vmem:[%s1645_s12 + $0x68] sm:$0xff] (!%p852_p5), %v1379_v1 }
 0x27e   : > { %698 = vst [vmem:[%s1645_s12 + $0x70] sm:$0xff] %v1379_v1  ;;  %699 = vst [vmem:[%s1645_s12 + $0x78] sm:$0xff] %v1379_v1 }
 0x27f PF: > { %s860_s16 = sshll.u32 %s1363_s6, 11  ;;  %s716_s23 = sshll.u32 %s1645_s12, 4  ;;  %s1723_s23 = int_to_ptr.vmem [resolvable:$true] %s716_s23 }
 0x280   : > { %s1720_s9 = scalar_lea.hbm %s1778_s5, %s860_s16  ;;  %s1727_s11 = scalar_lea.sflag [#allocation6], %s254_s22 }
 0x281   : > { %s1283_s27 = scalar_lea.vmem %s1723_s23, 2048  ;;  %p1799_p2 = scmp.ne.s32.totalorder %s1788_s15, 0 }
 0x282   : > { %p1284_p0 = scmp.ne.s32.totalorder %s1723_s23, %s1283_s27  ;;  %s1380_s6 = smov [#allocation10]  }
 0x283   : > { %s1287_s17 = sshll.u32 %s1380_s6, 4  ;;  %s1288_s17 = int_to_ptr.vmem [resolvable:$false] %s1287_s17 }
 0x284   : > { %p1285_p13 = pnand %p1284_p0, %p1799_p2  ;;  %s1289_s18 = scalar_lea.vmem %s1288_s17, 4096 }
 0x285   : > { %p1290_p7 = scmp.lt.s32.totalorder %s1723_s23, %s1288_s17  ;;  %p1291_p3 = scmp.lt.s32.totalorder %s1289_s18, %s1283_s27 }
 0x286   : > { %p1286_p6 = pneg %p1285_p13 }
 0x287   : > { %p1292_p11 = por %p1291_p3, %p1290_p7 }
 0x289   : > { %p1293_p10 = pnand %p1292_p11, %p1286_p6 }
 0x28b   : > { %1296 = shalt.err (!%p1293_p10)
}
 0x28c   : > { %s1297_s22 = scalar_lea.hbm %s1720_s9, 2048  ;;  %s1301_s13 = scalar_lea.hbm %s1778_s5, 6144 }
 0x28d   : > { %p1298_p8 = scmp.ne.s32.totalorder %s1720_s9, %s1297_s22  ;;  %p1302_p1 = scmp.lt.u32.totalorder %s1720_s9, %s1778_s5 }
 0x28e   : > { %p1303_p12 = scmp.lt.u32.totalorder %s1301_s13, %s1297_s22  ;;  %p1305_p0 = scmp.lt.u32.totalorder %s1297_s22, %s1720_s9 }
 0x28f   : > { %p1299_p4 = pnand %p1298_p8, %p1799_p2 }
 0x290   : > { %p1304_p5 = por %p1303_p12, %p1302_p1 }
 0x291   : > { %p1300_p9 = pneg %p1299_p4 }
 0x292   : > { %p1306_p13 = por %p1305_p0, %p1304_p5 }
 0x294   : > { %p1307_p6 = pnand %p1306_p13, %p1300_p9 }
 0x296   : > { %1310 = shalt.err (!%p1307_p6)
}
 0x297   : > { %s1381_s19 = smov 128   ;;  %s1382_s16 = smov 8  }
 0x298   : > { %1109 = dma.vmem_to_hbm [thread:$0]  (%p1799_p2), %s1723_s23, 2048, %s1720_s9, %s1727_s11, %s1381_s19, %s1381_s19, %s1382_s16  }
 0x299 PF: > { %p1129_p7 = scmp.ge.s32.totalorder %s1371_s8, 2  ;;  %s731_s25 = sand.u32 1, %s1351_s28  }
 0x29a   : > { %p1800_p3 = scmp.ne.s32.totalorder %s1789_s21, 0  ;;  %s732_s26 = scalar_lea.sflag [#allocation6], %s731_s25 }
 0x29c   : > { %p1123_p11 = pnand %p1129_p7, %p1800_p3 }
 0x29e   : > { %1346 = dma.done.wait (!%p1123_p11), %s732_s26, 2048  }
 0x29f   : > { %1348 = vsyncadd (!%p1123_p11), %s732_s26, 4294965248  ;;  %s26_s8 = sadd.s32 1, %s1371_s8   ;;  %s1801_s28 = smov %s1355_s29 }
 0x2a0   : > { %p23_p10 = scmp.ge.s32.totalorder %s26_s8, 5   ;;  %s1802_s29 = smov %s1359_s30 }
 0x2a1   : > { %s1803_s30 = smov %s1475_s14  ;;  %s1804_s6 = smov %s1367_s7 }
 0x2a2   : > { %s1805_s7 = smov %s1807_s0  ;;  %25 = sbr.rel (!%p23_p10) target bundleno = 19 (0x13), region = 106 }
 0x2a9   :  { %737 = vsyncpa [#allocation5], 1 }
 0x2aa   :  { %739 = vsyncpa [#allocation5 + $0x1], 1 }
 0x2ab   :  { %740 = vsyncpa [#allocation8], 1 }
 0x2ac   :  { %742 = vsyncpa [#allocation8 + $0x1], 1 }
 0x2ad   :  { %743 = vsyncpa [#allocation6], 1 }
 0x2ae   :  { %745 = vsyncpa [#allocation6 + $0x1], 1 }

</bundles_post_ra>
